<compile_context>
chip_gen: v5e
topology: v5e:2x2
jax: 0.10.0
libtpu: 0.0.40
codegen_flags: <defaults>
</compile_context>

<pallas_src>
import jax
import jax.numpy as jnp
from jax.experimental import pallas as pl
from jax.experimental.pallas import tpu as pltpu

LN_EPS = 1e-5  # torch nn.LayerNorm default


def _round_up(x, m):
    return (x + m - 1) // m * m


def _pick_tile(total, unit, target):
    """Largest multiple of `unit` that divides `total` and is <= max(target, unit)."""
    m = total // unit
    best = 1
    for d in range(1, m + 1):
        if m % d == 0 and d * unit <= max(target, unit):
            best = d
    return best * unit


def _vmem_capacity_bytes():
    try:
        return int(pltpu.get_tpu_info().vmem_capacity_bytes)
    except Exception:
        return 64 * 1024 * 1024  # conservative (v7x-sized) fallback


def mlp_head_kernel(x_ref, gamma_ref, beta_ref, wt_ref, b_ref, o_ref, y_ref):
    # LayerNorm once per batch tile (only at class tile 0); cache into VMEM
    # scratch and reuse for every class tile of this batch tile.
    # Requires class axis = "arbitrary" (sequential, tile 0 first).
    @pl.when(pl.program_id(1) == 0)
    def _():
        x = x_ref[...].astype(jnp.float32)                     # (tm, D), f32 stats
        mean = jnp.mean(x, axis=-1, keepdims=True)
        centered = x - mean
        var = jnp.mean(centered * centered, axis=-1, keepdims=True)
        xn = centered * jax.lax.rsqrt(var + LN_EPS)
        y = xn * gamma_ref[...] + beta_ref[...]                # gamma/beta f32
        y_ref[...] = y.astype(y_ref.dtype)                     # cast once (>= bf16)

    # Linear tile: (tm, D) @ (D, tc) on the MXU, f32 accumulate; operands stay
    # in their (low-precision) native dtype.
    out = jnp.dot(y_ref[...], wt_ref[...], preferred_element_type=jnp.float32)
    out = out + b_ref[...]
    o_ref[...] = out.astype(o_ref.dtype)


def init_mlp_head_params(weight, bias, gamma, beta, *,
                         param_dtype=jnp.bfloat16, class_pad=512):
    """One-time parameter preprocessing (NOT in the per-call path):
       - transpose torch-layout (C, D) weight to (D, C),
       - pad the class dim up to a multiple of `class_pad` (lane-dense output,
         full-width MXU N, no degenerate 128-wide class tiles),
       - cast the weight to bf16 by default (full MXU rate, halved HBM stream)."""
    C, D = weight.shape
    C_pad = _round_up(C, max(128, class_pad))
    w_dtype = jnp.dtype(param_dtype if param_dtype is not None else weight.dtype)
    wt = jnp.zeros((D, C_pad), dtype=w_dtype).at[:, :C].set(weight.T.astype(w_dtype))
    b = jnp.zeros((1, C_pad), jnp.float32).at[:, :C].set(bias.astype(jnp.float32))
    return {
        "wt": wt,
        "bias": b,
        "gamma": gamma.reshape(1, D).astype(jnp.float32),
        "beta": beta.reshape(1, D).astype(jnp.float32),
        "num_classes": C,
    }


def mlp_head(z, params, *, tm_target=None, tc_target=None, min_batch_tiles=None):
    """z: (B, D) -> (B, num_classes) in z.dtype."""
    wt, bias = params["wt"], params["bias"]
    gamma, beta = params["gamma"], params["beta"]
    C = params["num_classes"]
    B, D = z.shape
    C_pad = wt.shape[1]

    vmem_cap = _vmem_capacity_bytes()
    vmem_limit = int(vmem_cap * 0.75)           # headroom for compiler scratch
    big_vmem = vmem_cap >= 96 * 1024 * 1024     # v5e/v6e: 128 MiB; v7x: 64 MiB

    if tc_target is None:
        tc_target = 1024 if big_vmem else 512
    if tm_target is None:
        tm_target = 768 if big_vmem else 384
    if min_batch_tiles is None:
        # 64 MiB-VMEM chips (v7x) have 2 TensorCores; keep both busy if possible.
        min_batch_tiles = 2 if not big_vmem else 1

    # Class tile: multiple of 128 dividing the padded class dim.
    tc = _pick_tile(C_pad, 128, tc_target)
    n_ct = C_pad // tc

    # Batch: pad only to a multiple of 8 (cheap), pick tm among its divisors.
    B_pad = _round_up(B, 8)
    if B_pad != B:
        z = jnp.pad(z, ((0, B_pad - B), (0, 0)))

    # LN scratch dtype: weight dtype, but never below bf16 (accuracy of LN).
    w_dtype = jnp.dtype(wt.dtype)
    ln_dtype = w_dtype if w_dtype in (jnp.dtype(jnp.float32), jnp.dtype(jnp.bfloat16)) \
        else jnp.dtype(jnp.bfloat16)

    # Working-set budget: cap tm so double-buffered pipeline fits the VMEM limit.
    x_bytes = jnp.dtype(z.dtype).itemsize
    w_bytes = w_dtype.itemsize
    ln_bytes = jnp.dtype(ln_dtype).itemsize
    out_bytes = jnp.dtype(z.dtype).itemsize
    fixed = 2 * D * tc * w_bytes + 2 * tc * 4 + 4 * D * 4     # W, bias, gamma/beta
    per_row = 2 * D * x_bytes + D * ln_bytes + 2 * tc * out_bytes
    tm_budget = max(8, (vmem_limit - fixed) // max(per_row, 1))
    eff_tm_target = max(8, (min(tm_target, tm_budget) // 8) * 8)
    tm = _pick_tile(B_pad, 8, eff_tm_target)

    # Megacore: if batch allows, ensure >= min_batch_tiles tiles on the
    # "parallel" axis (relevant on 2-TC chips at small batch).
    if min_batch_tiles > 1 and B_pad // tm < min_batch_tiles:
        for cand in range(tm - 8, 0, -8):
            if B_pad % cand == 0 and B_pad // cand >= min_batch_tiles:
                tm = cand
                break

    n_bt = B_pad // tm

    # W^T triple-buffering near the roofline balance point (big-VMEM chips only).
    w_pipeline_mode = None
    if big_vmem and n_ct >= 3 and (fixed + D * tc * w_bytes + per_row * tm) <= vmem_limit:
        w_pipeline_mode = pl.Buffered(3)
    w_spec_kwargs = {} if w_pipeline_mode is None else {"pipeline_mode": w_pipeline_mode}

    cost = pl.CostEstimate(
        flops=2 * B_pad * D * C_pad + 8 * B_pad * D,
        transcendentals=B_pad,  # one rsqrt per row
        bytes_accessed=(B_pad * D * x_bytes                 # x read once
                        + n_bt * D * C_pad * w_bytes        # W re-streamed per batch tile
                        + B_pad * C_pad * out_bytes         # output
                        + n_bt * C_pad * 4 + 2 * D * 4),    # bias, gamma/beta
    )

    out_pad = pl.pallas_call(
        mlp_head_kernel,
        out_shape=jax.ShapeDtypeStruct((B_pad, C_pad), z.dtype),
        grid_spec=pltpu.PrefetchScalarGridSpec(
            num_scalar_prefetch=0,
            grid=(n_bt, n_ct),                               # batch outer, class inner
            in_specs=[
                pl.BlockSpec((tm, D), lambda b, c: (b, 0)),  # x
                pl.BlockSpec((1, D), lambda b, c: (0, 0)),   # gamma (invariant)
                pl.BlockSpec((1, D), lambda b, c: (0, 0)),   # beta  (invariant)
                pl.BlockSpec((D, tc), lambda b, c: (0, c), **w_spec_kwargs),  # W^T
                pl.BlockSpec((1, tc), lambda b, c: (0, c)),  # bias tile
            ],
            out_specs=pl.BlockSpec((tm, tc), lambda b, c: (b, c)),
            scratch_shapes=[pltpu.VMEM((tm, D), ln_dtype)],  # cached LN(x) tile
        ),
        compiler_params=pltpu.CompilerParams(
            # Class axis MUST stay "arbitrary": the LN scratch is filled at
            # class tile 0 and reused sequentially.
            dimension_semantics=("parallel", "arbitrary"),
            vmem_limit_bytes=vmem_limit,
        ),
        cost_estimate=cost,
    )(z, gamma, beta, wt, bias)

    return out_pad[:B, :C]


def mlp_head_ref(z, gamma, beta, weight, bias):
    x = z.astype(jnp.float32)
    mean = jnp.mean(x, axis=-1, keepdims=True)
    var = jnp.mean((x - mean) ** 2, axis=-1, keepdims=True)
    xn = (x - mean) * jax.lax.rsqrt(var + LN_EPS)
    y = xn * gamma + beta
    return (y @ weight.T.astype(jnp.float32) + bias).astype(z.dtype)


if __name__ == "__main__":
    batch, emb_dim, num_classes = 8, 32, 16

    key = jax.random.PRNGKey(0)
    kz, kg, kb, kw, kbias = jax.random.split(key, 5)

    z = jax.random.normal(kz, (batch, emb_dim), dtype=jnp.float32)
    gamma = 1.0 + 0.01 * jax.random.normal(kg, (emb_dim,), dtype=jnp.float32)
    beta = 0.01 * jax.random.normal(kb, (emb_dim,), dtype=jnp.float32)
    weight = jax.random.normal(kw, (num_classes, emb_dim), dtype=jnp.float32) * 0.05
    bias = jax.random.normal(kbias, (num_classes,), dtype=jnp.float32) * 0.05

    # One-time init: transpose + lane-pad + bf16-cast the weight (outside the
    # per-call path).
    params = init_mlp_head_params(weight, bias, gamma, beta)

    out = mlp_head(z, params)
    out = jax.block_until_ready(out)

    ref = mlp_head_ref(z, gamma, beta, weight, bias)
    assert out.shape == (batch, num_classes)
    # bf16 weights / LN-activation cast -> relaxed tolerance vs the f32 reference.
    assert jnp.allclose(out, ref, atol=2e-2, rtol=2e-2), "mismatch vs reference"

    print("KERNEL_OK")
</pallas_src>

<mosaic_0001>
module attributes {stable_mosaic.version = 11 : i64} {
  func.func @mlp_head_kernel(%arg0: i32, %arg1: i32, %arg2: memref<8x32xf32, #tpu.memory_space<vmem>>, %arg3: memref<1x32xf32, #tpu.memory_space<vmem>>, %arg4: memref<1x32xf32, #tpu.memory_space<vmem>>, %arg5: memref<32x512xbf16, #tpu.memory_space<vmem>>, %arg6: memref<1x512xf32, #tpu.memory_space<vmem>>, %arg7: memref<8x512xf32, #tpu.memory_space<vmem>>, %arg8: memref<8x32xbf16, #tpu.memory_space<vmem>>) attributes {dimension_semantics = [#tpu.dimension_semantics<parallel>, #tpu.dimension_semantics<arbitrary>], iteration_bounds = array<i64: 1, 1>, scalar_prefetch = 0 : i64, scratch_operands = 1 : i64, tpu.core_type = #tpu.core_type<tc>, window_params = [{transform_indices = @transform_0, window_bounds = array<i64: 8, 32>}, {pipeline_mode = #tpu.pipeline_mode<synchronous>, transform_indices = @transform_1, window_bounds = array<i64: 1, 32>}, {pipeline_mode = #tpu.pipeline_mode<synchronous>, transform_indices = @transform_2, window_bounds = array<i64: 1, 32>}, {transform_indices = @transform_3, window_bounds = array<i64: 32, 512>}, {transform_indices = @transform_4, window_bounds = array<i64: 1, 512>}, {transform_indices = @transform_5, window_bounds = array<i64: 8, 512>}]} {
    %c0_i32 = arith.constant 0 : i32
    %0 = arith.cmpi eq, %arg1, %c0_i32 : i32
    %1 = arith.extui %0 : i1 to i32
    %c0_i32_0 = arith.constant 0 : i32
    %2 = arith.cmpi ne, %1, %c0_i32_0 : i32
    scf.if %2 {
      %c0_8 = arith.constant 0 : index
      %c0_9 = arith.constant 0 : index
      %10 = vector.load %arg2[%c0_8, %c0_9] : memref<8x32xf32, #tpu.memory_space<vmem>>, vector<8x32xf32>
      %cst_10 = arith.constant dense<0.000000e+00> : vector<8xf32>
      %11 = vector.multi_reduction <add>, %10, %cst_10 [1] : vector<8x32xf32> to vector<8xf32>
      %12 = vector.shape_cast %11 : vector<8xf32> to vector<8x1xf32>
      %cst_11 = arith.constant 3.200000e+01 : f32
      %13 = vector.broadcast %cst_11 : f32 to vector<8x1xf32>
      %14 = arith.divf %12, %13 : vector<8x1xf32>
      %15 = vector.broadcast %14 : vector<8x1xf32> to vector<8x32xf32>
      %16 = arith.subf %10, %15 : vector<8x32xf32>
      %17 = arith.mulf %16, %16 : vector<8x32xf32>
      %cst_12 = arith.constant dense<0.000000e+00> : vector<8xf32>
      %18 = vector.multi_reduction <add>, %17, %cst_12 [1] : vector<8x32xf32> to vector<8xf32>
      %19 = vector.shape_cast %18 : vector<8xf32> to vector<8x1xf32>
      %cst_13 = arith.constant 3.200000e+01 : f32
      %20 = vector.broadcast %cst_13 : f32 to vector<8x1xf32>
      %21 = arith.divf %19, %20 : vector<8x1xf32>
      %cst_14 = arith.constant 9.99999974E-6 : f32
      %22 = vector.broadcast %cst_14 : f32 to vector<8x1xf32>
      %23 = arith.addf %21, %22 : vector<8x1xf32>
      %24 = math.rsqrt %23 : vector<8x1xf32>
      %25 = vector.broadcast %24 : vector<8x1xf32> to vector<8x32xf32>
      %26 = arith.mulf %16, %25 : vector<8x32xf32>
      %c0_15 = arith.constant 0 : index
      %c0_16 = arith.constant 0 : index
      %27 = vector.load %arg3[%c0_15, %c0_16] : memref<1x32xf32, #tpu.memory_space<vmem>>, vector<1x32xf32>
      %28 = vector.broadcast %27 : vector<1x32xf32> to vector<8x32xf32>
      %29 = arith.mulf %26, %28 : vector<8x32xf32>
      %c0_17 = arith.constant 0 : index
      %c0_18 = arith.constant 0 : index
      %30 = vector.load %arg4[%c0_17, %c0_18] : memref<1x32xf32, #tpu.memory_space<vmem>>, vector<1x32xf32>
      %31 = vector.broadcast %30 : vector<1x32xf32> to vector<8x32xf32>
      %32 = arith.addf %29, %31 : vector<8x32xf32>
      %33 = arith.truncf %32 : vector<8x32xf32> to vector<8x32xbf16>
      %c0_19 = arith.constant 0 : index
      %c0_20 = arith.constant 0 : index
      %34 = vector.load %arg8[%c0_19, %c0_20] : memref<8x32xbf16, #tpu.memory_space<vmem>>, vector<8x32xbf16>
      tpu.vector_store %arg8[%c0_19, %c0_20], %33 {strides = array<i32>} : memref<8x32xbf16, #tpu.memory_space<vmem>>, vector<8x32xbf16>,
    } else {
    }
    %c0 = arith.constant 0 : index
    %c0_1 = arith.constant 0 : index
    %3 = vector.load %arg8[%c0, %c0_1] : memref<8x32xbf16, #tpu.memory_space<vmem>>, vector<8x32xbf16>
    %c0_2 = arith.constant 0 : index
    %c0_3 = arith.constant 0 : index
    %4 = vector.load %arg5[%c0_2, %c0_3] : memref<32x512xbf16, #tpu.memory_space<vmem>>, vector<32x512xbf16>
    %cst = arith.constant dense<0.000000e+00> : vector<8x512xf32>
    %5 = tpu.matmul %3, %4, %cst {dimension_numbers = #tpu.dot_dimension_numbers<[1], [0], [0], [1], [0, 0, 1, 1], [], []>} : vector<8x32xbf16>, vector<32x512xbf16>, vector<8x512xf32> -> vector<8x512xf32>
    %c0_4 = arith.constant 0 : index
    %c0_5 = arith.constant 0 : index
    %6 = vector.load %arg6[%c0_4, %c0_5] : memref<1x512xf32, #tpu.memory_space<vmem>>, vector<1x512xf32>
    %7 = vector.broadcast %6 : vector<1x512xf32> to vector<8x512xf32>
    %8 = arith.addf %5, %7 : vector<8x512xf32>
    %c0_6 = arith.constant 0 : index
    %c0_7 = arith.constant 0 : index
    %9 = vector.load %arg7[%c0_6, %c0_7] : memref<8x512xf32, #tpu.memory_space<vmem>>, vector<8x512xf32>
    tpu.vector_store %arg7[%c0_6, %c0_7], %8 {strides = array<i32>} : memref<8x512xf32, #tpu.memory_space<vmem>>, vector<8x512xf32>,
    return
  }
  func.func @transform_0(%arg0: i32, %arg1: i32) -> (i32, i32) {
    %c0_i32 = arith.constant 0 : i32
    %c0_i32_0 = arith.constant 0 : i32
    return %arg0, %c0_i32 : i32, i32
  }
  func.func @transform_1(%arg0: i32, %arg1: i32) -> (i32, i32) {
    %c0_i32 = arith.constant 0 : i32
    %c0_i32_0 = arith.constant 0 : i32
    %c0_i32_1 = arith.constant 0 : i32
    return %c0_i32, %c0_i32_0 : i32, i32
  }
  func.func @transform_2(%arg0: i32, %arg1: i32) -> (i32, i32) {
    %c0_i32 = arith.constant 0 : i32
    %c0_i32_0 = arith.constant 0 : i32
    %c0_i32_1 = arith.constant 0 : i32
    return %c0_i32, %c0_i32_0 : i32, i32
  }
  func.func @transform_3(%arg0: i32, %arg1: i32) -> (i32, i32) {
    %c0_i32 = arith.constant 0 : i32
    %c0_i32_0 = arith.constant 0 : i32
    return %c0_i32, %arg1 : i32, i32
  }
  func.func @transform_4(%arg0: i32, %arg1: i32) -> (i32, i32) {
    %c0_i32 = arith.constant 0 : i32
    %c0_i32_0 = arith.constant 0 : i32
    return %c0_i32, %arg1 : i32, i32
  }
  func.func @transform_5(%arg0: i32, %arg1: i32) -> (i32, i32) {
    %c0_i32 = arith.constant 0 : i32
    return %arg0, %arg1 : i32, i32
  }
}

</mosaic_0001>

<bundles_post_ra>
// kernel: tpu_custom_call.1
= control target key start
LH: loop header
LB: loop body
LE: loop exit
PB: predicated region body
PF: predicated region fallthrough
CT: control target
= control target key end

     0   :  { %10 = vsyncpa [#allocation4], 0  ;;  %s513_s0 = inlined_call_operand.hbm [shape: f32[8,32], index: 0, kind: input, shape index: {}]   ;;  %s514_s1 = inlined_call_operand.hbm [shape: f32[1,32], index: 1, kind: input, shape index: {}]   ;;  %s515_s2 = inlined_call_operand.vmem [shape: f32[1,32], index: 2, kind: input, shape index: {}]   ;;  %s516_s3 = inlined_call_operand.hbm [shape: bf16[32,512], index: 3, kind: input, shape index: {}]   ;;  %s517_s4 = inlined_call_operand.hbm [shape: f32[1,512], index: 4, kind: input, shape index: {}]   ;;  %s518_s5 = inlined_call_operand.hbm [shape: f32[8,512], index: 5, kind: output, shape index: {}]  }
   0x1   :  { %11 = vsyncpa [#allocation7], 0 }
   0x2   :  { %12 = vsyncpa [#allocation10], 0  ;;  %s30_s20 = sshll.u32 %s514_s1, 4  ;;  %s31_s20 = int_to_ptr.hbm [resolvable:$true] %s30_s20 }
   0x3   :  { %13 = vsyncpa [#allocation5], 0  ;;  %s451_s21 = smov [#allocation6]   ;;  %s19_s25 = sshll.u32 %s513_s0, 4  ;;  %s20_s25 = int_to_ptr.hbm [resolvable:$true] %s19_s25 }
   0x4   :  { %s32_s22 = sshll.u32 %s451_s21, 4  ;;  %s452_s26 = smov [#allocation3]   ;;  %s33_s22 = int_to_ptr.vmem [resolvable:$true] %s32_s22 }
   0x5   :  { %35 = dma.hbm_to_vmem [thread:$0]  %s31_s20, 16, %s33_s22, [#allocation7]  }
   0x6   :  { %s21_s27 = sshll.u32 %s452_s26, 4  ;;  %s42_s30 = sshll.u32 %s516_s3, 4  ;;  %s22_s27 = int_to_ptr.vmem [resolvable:$true] %s21_s27  ;;  %s43_s30 = int_to_ptr.hbm [resolvable:$true] %s42_s30 }
   0x7   :  { %24 = dma.hbm_to_vmem [thread:$0]  %s20_s25, 128, %s22_s27, [#allocation4]  }
   0x8   :  { %s453_s1 = smov [#allocation8]   ;;  %s56_s9 = sshll.u32 %s517_s4, 4  ;;  %s57_s9 = int_to_ptr.hbm [resolvable:$true] %s56_s9 }
   0x9   :  { %s44_s6 = sshll.u32 %s453_s1, 4  ;;  %s454_s10 = smov 256   ;;  %s45_s6 = int_to_ptr.vmem [resolvable:$true] %s44_s6 }
   0xa   :  { %s455_s0 = smov 16   ;;  %s456_s11 = smov [#allocation9]  }
   0xb   :  { %50 = dma.hbm_to_vmem [thread:$0]  %s43_s30, 1024, %s45_s6, [#allocation7], %s454_s10, %s454_s10, %s455_s0  }
   0xc   :  { %s58_s12 = sshll.u32 %s456_s11, 4  ;;  %s59_s12 = int_to_ptr.vmem [resolvable:$true] %s58_s12 }
   0xd   :  { %61 = dma.hbm_to_vmem [thread:$0]  %s57_s9, 64, %s59_s12, [#allocation10]  }
   0xe   :  { %443 = dma.done.wait [#allocation4], 128  }
   0xf   :  { %444 = vsyncadd [#allocation4], 4294967168 }
  0x10   :  { %445 = dma.done.wait [#allocation7], 1040  }
  0x11   :  { %446 = vsyncadd [#allocation7], 4294966256 }
  0x12   :  { %447 = dma.done.wait [#allocation10], 64  }
  0x13   :  { %448 = vsyncadd [#allocation10], 4294967232  ;;  %vm84_vm0 = vcmask 261120   ;;  %v83_v0 = vld [vmem:[#allocation3] sm:$0xff]  ;;  %v457_v2 = vmov 32.0   ;;  %vm125_vm5 = vcmask 257024  }
  0x14   :  { %v85_v1 = vsel %vm84_vm0, %v83_v0, 0.0  ;;  %319 = vrcp.f32 %v457_v2  ;;  %v283_v14 = vld [vmem:[#allocation8 + $0x20] sm:$0xf]  ;;  %v307_v15 = vld [vmem:[#allocation8 + $0x2c] sm:$0xf0]  ;;  %s253_s16 = sshll.u32 %s518_s5, 4  ;;  %s254_s16 = int_to_ptr.hbm [resolvable:$true] %s253_s16 }
  0x15   :  { %86 = vadd.xlane.f32.xlu0 %v85_v1  ;;  %v305_v16 = vld [vmem:[#allocation8 + $0x24] sm:$0xf]  ;;  %v284_v17 = vor.u32 %v307_v15, %v283_v14  ;;  %v285_v18 = vld [vmem:[#allocation8 + $0x30] sm:$0xf0]  ;;  %v291_v19 = vld [vmem:[#allocation8 + $0x28] sm:$0xf] }
  0x16   :  { %v308_v20 = vld [vmem:[#allocation8 + $0x34] sm:$0xf0]  ;;  %v288_v21 = vor.u32 %v305_v16, %v285_v18  ;;  %v306_v23 = vld [vmem:[#allocation8 + $0x2c] sm:$0xf]  ;;  %v293_v24 = vld [vmem:[#allocation8 + $0x38] sm:$0xf0] }
  0x17   :  { %v292_v22 = vor.u32 %v308_v20, %v291_v19  ;;  %v267_v25 = vld [vmem:[#allocation8] sm:$0xf]  ;;  %196 = vmatpush.bf16.msra.mxu0 %v284_v17  ;;  %v296_v27 = vor.u32 %v306_v23, %v293_v24  ;;  %v303_v28 = vld [vmem:[#allocation8 + $0xc] sm:$0xf0]  ;;  %v301_v29 = vld [vmem:[#allocation8 + $0x4] sm:$0xf] }
  0x18   :  { %v269_v30 = vld [vmem:[#allocation8 + $0x10] sm:$0xf0]  ;;  %209 = vmatpush.bf16.msra.mxu1 %v288_v21  ;;  %v268_v32 = vor.u32 %v303_v28, %v267_v25  ;;  %v275_v34 = vld [vmem:[#allocation8 + $0x8] sm:$0xf]  ;;  %v304_v35 = vld [vmem:[#allocation8 + $0x14] sm:$0xf0] }
  0x19   :  { %222 = vmatpush.bf16.msra.mxu2 %v292_v22  ;;  %v272_v33 = vor.u32 %v301_v29, %v269_v30  ;;  %v302_v36 = vld [vmem:[#allocation8 + $0xc] sm:$0xf]  ;;  %235 = vmatpush.bf16.msra.mxu3 %v296_v27  ;;  %v276_v37 = vor.u32 %v304_v35, %v275_v34  ;;  %v277_v38 = vld [vmem:[#allocation8 + $0x18] sm:$0xf0]  ;;  %v318_v49 = vld [vmem:[%s515_s2] ss:$0 sm:$0xff] }
  0x1a   :  { %v320_v3 = vpop.eup %319  ;;  %v280_v40 = vor.u32 %v302_v36, %v277_v38  ;;  %v317_v47 = vld [vmem:[#allocation6] ss:$0 sm:$0xff]  ;;  %v136_v55 = vld [vmem:[#allocation9] sm:$0xf]  ;;  %s458_s2 = smov [#allocation11]  }
  0x1b   :  { %v89_v4 = vmul.f32 32.0, %v320_v3  ;;  %vm93_vm1 = vweird.f32 %v320_v3  ;;  %197 = vmatpush.bf16.msra.mxu0 %v268_v32  ;;  %v138_v56 = vperm.slane %v136_v55, 0  ;;  %v139_v57 = vperm.slane %v136_v55, 1  ;;  %s251_s13 = sshll.u32 %s458_s2, 4  ;;  %s252_s13 = int_to_ptr.vmem [resolvable:$true] %s251_s13 }
  0x1c   :  { %210 = vmatpush.bf16.msra.mxu1 %v272_v33  ;;  %v140_v62 = vperm.slane %v136_v55, 2  ;;  %v141_v63 = vperm.slane %v136_v55, 3 }
  0x1d   :  { %v90_v5 = vsub.f32 1.0, %v89_v4  ;;  %223 = vmatpush.bf16.msra.mxu2 %v276_v37  ;;  %236 = vmatpush.bf16.msra.mxu3 %v280_v40 }
  0x1f   :  { %v91_v6 = vmul.f32 %v320_v3, %v90_v5 }
  0x21   :  { %v92_v7 = vadd.f32 %v320_v3, %v91_v6 }
  0x23   :  { %v94_v8 = vsel %vm93_vm1, %v320_v3, %v92_v7 }
  0x88   :  { %v87_v9 = vpop.xlane.xlu0 %86 }
  0x89   :  { %v95_v10 = vmul.f32 %v94_v8, %v87_v9 }
  0x8b   :  { %v96_v11 = vsub.f32 %v83_v0, %v95_v10 }
  0x8d   :  { %v97_v12 = vmul.f32 %v96_v11, %v96_v11 }
  0x8f   :  { %v98_v13 = vsel %vm84_vm0, %v97_v12, 0.0 }
  0x90   :  { %99 = vadd.xlane.f32.xlu0 %v98_v13 }
 0x103   :  { %v100_v26 = vpop.xlane.xlu0 %99 }
 0x104   :  { %v101_v31 = vmul.f32 %v100_v26, %v94_v8 }
 0x106   :  { %v102_v39 = vadd.f32 1e-05, %v101_v31 }
 0x108   :  { %321 = vrsqrt.f32 %v102_v39  ;;  %vm109_vm3 = vweird.f32 %v102_v39 }
 0x10e   :  { %v322_v41 = vpop.eup %321 }
 0x10f   :  { %v104_v42 = vmul.f32 %v322_v41, %v102_v39  ;;  %vm110_vm2 = vweird.f32 %v322_v41 }
 0x110   :  { %vm111_vm4 = vmor %vm109_vm3, %vm110_vm2 }
 0x111   :  { %v105_v43 = vmul.f32 %v322_v41, %v104_v42 }
 0x113   :  { %v106_v44 = vmul.f32 0.5, %v105_v43 }
 0x115   :  { %v107_v45 = vsub.f32 1.5, %v106_v44 }
 0x117   :  { %v108_v46 = vmul.f32 %v322_v41, %v107_v45 }
 0x119   :  { %v112_v48 = vsel %vm111_vm4, %v322_v41, %v108_v46 }
 0x11a   :  { %v113_v50 = vmul.f32 %v112_v48, %v96_v11 }
 0x11c   :  { %v118_v51 = vmul.f32 %v317_v47, %v113_v50 }
 0x11e   :  { %v123_v52 = vadd.f32 %v318_v49, %v118_v51 }
 0x120   :  { %v124_v53 = vpack.c.bf16 %v123_v52, %v123_v52 }
 0x122   :  { %126 = vst.msk [vmem:[#allocation2] sm:$0xf] %vm125_vm5, %v124_v53 }
 0x129   :  { %v127_v54 = vld [vmem:[#allocation2] sm:$0xf] }
 0x12a   :  { %297 = vmatmul.msk.bf16.vlgmr.msra.gmra.mxu0 %vm84_vm0, %v127_v54  ;;  %298 = vmatmul.msk.bf16.vlgmr.msra.gmra.mxu1 %vm84_vm0, %v127_v54 }
 0x12b   :  { %299 = vmatmul.msk.bf16.vlgmr.msra.gmra.mxu2 %vm84_vm0, %v127_v54  ;;  %300 = vmatmul.msk.bf16.vlgmr.msra.gmra.mxu3 %vm84_vm0, %v127_v54 }
 0x1a7   :  { %v199_v58 = vpop.f32.mrf.mxu0  ;;  %v212_v59 = vpop.f32.mrf.mxu1 }
 0x1a8   :  { %v200_v60 = vadd.f32 %v199_v58, %v138_v56  ;;  %v213_v61 = vadd.f32 %v212_v59, %v139_v57 }
 0x1aa   :  { %242 = vst [vmem:[#allocation11] sm:$0xff] %v200_v60 }
 0x1ab   :  { %243 = vst [vmem:[#allocation11 + $0x8] sm:$0xff] %v213_v61 }
 0x1ae   :  { %v225_v0 = vpop.f32.mrf.mxu2  ;;  %v238_v1 = vpop.f32.mrf.mxu3 }
 0x1af   :  { %v226_v2 = vadd.f32 %v225_v0, %v140_v62  ;;  %v239_v3 = vadd.f32 %v238_v1, %v141_v63  ;;  %v201_v4 = vpop.f32.mrf.mxu0  ;;  %v214_v5 = vpop.f32.mrf.mxu1 }
 0x1b1   :  { %244 = vst [vmem:[#allocation11 + $0x10] sm:$0xff] %v226_v2 }
 0x1b2   :  { %245 = vst [vmem:[#allocation11 + $0x18] sm:$0xff] %v239_v3 }
 0x1b3   :  { %256 = dma.vmem_to_hbm [thread:$0]  %s252_s13, 512, %s254_s16, [#allocation5]  }
 0x1b6   :  { %v227_v6 = vpop.f32.mrf.mxu2  ;;  %v240_v7 = vpop.f32.mrf.mxu3 }
 0x1b7   :  { %449 = dma.done.wait [#allocation5], 512  }
 0x1b8   :  { %450 = vsyncadd [#allocation5], 4294966784 }
 0x1b9   :  { %261 = vsyncpa [#allocation4], 1 }
 0x1ba   :  { %262 = vsyncpa [#allocation7], 1 }
 0x1bb   :  { %263 = vsyncpa [#allocation10], 1 }
 0x1bc   :  { %264 = vsyncpa [#allocation5], 1 }

</bundles_post_ra>
